<compile_context>
chip_gen: v6e
topology: v6e:2x2x1
jax: 0.10.0
libtpu: 0.0.40
codegen_flags: <defaults>
</compile_context>

<pallas_src>
import math

import jax
import jax.numpy as jnp
from jax.experimental import pallas as pl
from jax.experimental.pallas import tpu as pltpu

_LANE = 128
_ROW_ALIGN = 32  # int8 label blocks want (32, 128) native tiles


def _round_up(x, m):
    return ((x + m - 1) // m) * m


def _tile_rows_cap(nclass, logit_itemsize, budget_bytes):
    """Max spatial-tile rows from the FULL per-step VMEM footprint.

    Per packed row of 128 pixels:
      2x (double-buffered) logits block + 2x (double-buffered) int8 label block
      + ~(2*C + 2) live f32 temporary planes inside the kernel body.
    """
    bytes_per_row = _LANE * (2 * (nclass * logit_itemsize + 1) + (2 * nclass + 2) * 4)
    cap = budget_bytes // max(1, bytes_per_row)
    return max(_ROW_ALIGN, (cap // _ROW_ALIGN) * _ROW_ALIGN)


def _make_dice_kernel(nclass, c_pad):
    def kernel(logits_ref, target_ref, inter_ref, union_ref, acc_ref):
        # logits_ref: (1, C, TR, 128)   input dtype (bf16/f32)
        # target_ref: (1, 1, TR, 128)   int8 labels (-1 marks spatial padding)
        # inter_ref/union_ref: (1, 1, C) f32, resident across the spatial axis
        # acc_ref: (2, C_pad, 128) f32 per-lane partial sums (0: inter, 1: union)
        s = pl.program_id(2)

        @pl.when(s == 0)
        def _init():
            acc_ref[...] = jnp.zeros_like(acc_ref)

        labels = target_ref[0, 0].astype(jnp.float32)  # (TR, 128)

        # Channel softmax with C unrolled; max chain in the native dtype
        # (bf16 max is exact; upcast only for the subtraction feeding exp).
        xs = [logits_ref[0, c] for c in range(nclass)]
        m = xs[0]
        for c in range(1, nclass):
            m = jnp.maximum(m, xs[c])
        m32 = m.astype(jnp.float32)
        es = [jnp.exp(xs[c].astype(jnp.float32) - m32) for c in range(nclass)]
        denom = es[0]
        for c in range(1, nclass):
            denom = denom + es[c]
        # EUP approximate reciprocal + one Newton-Raphson refinement
        # (denom in [1, C] so one step recovers ~f32 accuracy).
        r = pl.reciprocal(denom, approx=True)
        inv = r * (2.0 - denom * r)

        inter_rows = []
        union_rows = []
        for c in range(nclass):
            p_c = es[c] * inv                           # softmax prob, class c
            oh_c = (labels == c).astype(jnp.float32)    # one-hot plane (pad -> 0)
            inter_rows.append(jnp.sum(p_c * oh_c, axis=0, keepdims=True))   # (1,128)
            union_rows.append(jnp.sum(p_c, axis=0, keepdims=True)
                              + jnp.sum(oh_c, axis=0, keepdims=True))        # (1,128)
        if c_pad > nclass:
            pad = jnp.zeros((c_pad - nclass, _LANE), jnp.float32)
            inter_rows.append(pad)
            union_rows.append(pad)

        # Single full-tile accumulator update per step (no masked sub-tile RMW).
        acc_ref[0] += jnp.concatenate(inter_rows, axis=0)
        acc_ref[1] += jnp.concatenate(union_rows, axis=0)

        @pl.when(s == pl.num_programs(2) - 1)
        def _finish():
            inter_ref[...] = jnp.sum(acc_ref[0, :nclass, :], axis=1).reshape(1, 1, nclass)
            union_ref[...] = jnp.sum(acc_ref[1, :nclass, :], axis=1).reshape(1, 1, nclass)

    return kernel


class DiceLoss:
    """Pallas port of pancreas/losses.py DiceLoss (forward, softmax branch)."""

    def __init__(self, nclass, class_weights=None, smooth=1e-5,
                 tile_budget_bytes=16 << 20):
        self.smooth = smooth
        self.nclass = nclass
        self._tile_budget_bytes = tile_budget_bytes
        if class_weights is None:
            # Matches nn.Parameter(torch.ones((1, nclass))); unused in forward,
            # same as the PyTorch module.
            self.class_weights = jnp.ones((1, nclass), dtype=jnp.float32)
        else:
            cw = jnp.asarray(class_weights, dtype=jnp.float32)
            assert nclass == cw.shape[0]
            self.class_weights = cw

    def __call__(self, logits, target, mask=None):
        # logits: [N, C, H, W] or [N, C, D, H, W]; target: [N, 1, ...] int labels
        assert mask is None  # TODO(synk): masked inter/union weighting not implemented
        N, C = logits.shape[0], logits.shape[1]
        assert C > 1  # TODO(synk): C==1 sigmoid branch of get_probability not implemented
        S = math.prod(logits.shape[2:])

        rows = (S + _LANE - 1) // _LANE
        rows_aligned = _round_up(rows, _ROW_ALIGN)
        cap = _tile_rows_cap(C, logits.dtype.itemsize, self._tile_budget_bytes)

        if rows_aligned <= cap:
            tile_rows, splits, s_per_split = rows_aligned, 1, 1
        else:
            splits = 2  # guarantees 2-TensorCore utilization on v7x for any N
            n_chunks = _round_up(-(-rows_aligned // cap), splits)
            tile_rows = _round_up(-(-rows_aligned // n_chunks), _ROW_ALIGN)
            s_per_split = n_chunks // splits
        rows_padded = tile_rows * s_per_split * splits
        S_pad = rows_padded * _LANE
        padded = S_pad != S

        # Logits stay in their incoming dtype (bf16 halves the HBM stream);
        # labels travel as int8 (4x less traffic than int32).
        lg = logits.reshape(N, C, S)
        tg = target.reshape(N, 1, S).astype(jnp.int8)
        if padded:
            lg = jnp.pad(lg, ((0, 0), (0, 0), (0, S_pad - S)))
            # Padded pixels softmax to ~one-hot class 0; labels are -1 so the
            # one-hot (and inter) contribution is exactly 0.  The known
            # (S_pad - S) union over-count on class 0 is removed below.
            lg = lg.at[:, 0, S:].set(jnp.asarray(30.0, dtype=lg.dtype))
            tg = jnp.pad(tg, ((0, 0), (0, 0), (0, S_pad - S)), constant_values=-1)
        lg = lg.reshape(N, C, rows_padded, _LANE)
        tg = tg.reshape(N, 1, rows_padded, _LANE)

        c_pad = _round_up(C, 8)

        inter, union = pl.pallas_call(
            _make_dice_kernel(C, c_pad),
            out_shape=(
                jax.ShapeDtypeStruct((splits * N, 1, C), jnp.float32),
                jax.ShapeDtypeStruct((splits * N, 1, C), jnp.float32),
            ),
            grid_spec=pltpu.PrefetchScalarGridSpec(
                num_scalar_prefetch=0,
                grid=(splits, N, s_per_split),
                in_specs=[
                    pl.BlockSpec((1, C, tile_rows, _LANE),
                                 lambda p, n, s: (n, 0, p * s_per_split + s, 0)),
                    pl.BlockSpec((1, 1, tile_rows, _LANE),
                                 lambda p, n, s: (n, 0, p * s_per_split + s, 0)),
                ],
                out_specs=[
                    pl.BlockSpec((1, 1, C), lambda p, n, s: (p * N + n, 0, 0)),
                    pl.BlockSpec((1, 1, C), lambda p, n, s: (p * N + n, 0, 0)),
                ],
                scratch_shapes=[pltpu.VMEM((2, c_pad, _LANE), jnp.float32)],
            ),
            compiler_params=pltpu.CompilerParams(
                dimension_semantics=("parallel", "parallel", "arbitrary"),
                vmem_limit_bytes=32 * 1024 * 1024,
            ),
        )(lg, tg)

        inter = inter.reshape(splits, N, C).sum(axis=0)  # [N, C]
        union = union.reshape(splits, N, C).sum(axis=0)  # [N, C]
        if padded:
            # Remove the padded pixels' probability mass (all on class 0).
            union = union.at[:, 0].add(-float(S_pad - S))

        dice = (2.0 * inter + self.smooth) / (union + self.smooth)
        return 1.0 - jnp.mean(dice)


def _reference_dice_loss(logits, target, smooth=1e-5):
    """Pure-JAX reference mirroring the PyTorch forward (softmax branch)."""
    N, C = logits.shape[0], logits.shape[1]
    S = math.prod(logits.shape[2:])
    lg = logits.reshape(N, C, S).astype(jnp.float32)
    tg = target.reshape(N, 1, S).astype(jnp.int32)
    pred = jax.nn.softmax(lg, axis=1)
    one_hot = jnp.transpose(
        jax.nn.one_hot(tg[:, 0, :], C, dtype=jnp.float32), (0, 2, 1))  # [N, C, S]
    inter = jnp.sum(pred * one_hot, axis=2)
    union = jnp.sum(pred + one_hot, axis=2)
    dice = (2 * inter + smooth) / (union + smooth)
    return 1.0 - jnp.mean(dice)


if __name__ == "__main__":
    key = jax.random.PRNGKey(0)
    ks = jax.random.split(key, 8)

    # Test 1: bf16 logits (halved HBM stream), spatial NOT 32*128-aligned
    # (exercises padding + channel-0 union correction on bf16).
    N, C, H, W = 2, 4, 16, 16
    logits = jax.random.normal(ks[0], (N, C, H, W), dtype=jnp.float32).astype(jnp.bfloat16)
    target = jax.random.randint(ks[1], (N, 1, H, W), 0, C, dtype=jnp.int32)
    loss = jax.block_until_ready(DiceLoss(nclass=C)(logits, target))
    ref = jax.block_until_ready(_reference_dice_loss(logits, target))
    assert jnp.allclose(loss, ref, atol=1e-5, rtol=1e-5), (loss, ref)

    # Test 2: f32 logits, odd class count (class-dim padding to 8) + spatial pad.
    N2, C2, H2, W2 = 2, 3, 10, 10
    logits2 = jax.random.normal(ks[2], (N2, C2, H2, W2), dtype=jnp.float32)
    target2 = jax.random.randint(ks[3], (N2, 1, H2, W2), 0, C2, dtype=jnp.int32)
    loss2 = jax.block_until_ready(DiceLoss(nclass=C2)(logits2, target2))
    ref2 = jax.block_until_ready(_reference_dice_loss(logits2, target2))
    assert jnp.allclose(loss2, ref2, atol=1e-5, rtol=1e-5), (loss2, ref2)

    # Test 3: small tile budget + N=1 forces the multi-tile grid with the
    # 2-way spatial split (init / accumulate / finalize + wrapper split-sum).
    N3, C3, H3, W3 = 1, 4, 128, 128
    logits3 = jax.random.normal(ks[4], (N3, C3, H3, W3), dtype=jnp.float32)
    target3 = jax.random.randint(ks[5], (N3, 1, H3, W3), 0, C3, dtype=jnp.int32)
    loss3 = jax.block_until_ready(
        DiceLoss(nclass=C3, tile_budget_bytes=64 * 1024)(logits3, target3))
    ref3 = jax.block_until_ready(_reference_dice_loss(logits3, target3))
    assert jnp.allclose(loss3, ref3, atol=1e-5, rtol=1e-5), (loss3, ref3)

    # Test 4: 5D (3D volume) input, C=2.
    N4, C4, D4, H4, W4 = 1, 2, 4, 8, 8
    logits4 = jax.random.normal(ks[6], (N4, C4, D4, H4, W4), dtype=jnp.float32)
    target4 = jax.random.randint(ks[7], (N4, 1, D4, H4, W4), 0, C4, dtype=jnp.int32)
    loss4 = jax.block_until_ready(DiceLoss(nclass=C4)(logits4, target4))
    ref4 = jax.block_until_ready(_reference_dice_loss(logits4, target4))
    assert jnp.allclose(loss4, ref4, atol=1e-5, rtol=1e-5), (loss4, ref4)

    print("KERNEL_OK")
</pallas_src>

<mosaic_0001>
module attributes {stable_mosaic.version = 11 : i64} {
  func.func @kernel(%arg0: i32, %arg1: i32, %arg2: i32, %arg3: memref<1x4x32x128xbf16, #tpu.memory_space<vmem>>, %arg4: memref<1x1x32x128xi8, #tpu.memory_space<vmem>>, %arg5: memref<1x1x4xf32, #tpu.memory_space<vmem>>, %arg6: memref<1x1x4xf32, #tpu.memory_space<vmem>>, %arg7: memref<2x8x128xf32, #tpu.memory_space<vmem>>) attributes {dimension_semantics = [#tpu.dimension_semantics<parallel>, #tpu.dimension_semantics<parallel>, #tpu.dimension_semantics<arbitrary>], iteration_bounds = array<i64: 1, 2, 1>, scalar_prefetch = 0 : i64, scratch_operands = 1 : i64, tpu.core_type = #tpu.core_type<tc>, window_params = [{transform_indices = @transform_0, window_bounds = array<i64: 1, 4, 32, 128>}, {transform_indices = @transform_1, window_bounds = array<i64: 1, 1, 32, 128>}, {transform_indices = @transform_2, window_bounds = array<i64: 1, 1, 4>}, {transform_indices = @transform_3, window_bounds = array<i64: 1, 1, 4>}]} {
    %c0_i32 = arith.constant 0 : i32
    %0 = arith.cmpi eq, %arg2, %c0_i32 : i32
    %1 = arith.extui %0 : i1 to i32
    %c0_i32_0 = arith.constant 0 : i32
    %2 = arith.cmpi ne, %1, %c0_i32_0 : i32
    scf.if %2 {
      %cst_48 = arith.constant 0.000000e+00 : f32
      %108 = vector.broadcast %cst_48 : f32 to vector<2x8x128xf32>
      %c0_49 = arith.constant 0 : index
      %c0_50 = arith.constant 0 : index
      %c0_51 = arith.constant 0 : index
      %109 = vector.load %arg7[%c0_49, %c0_50, %c0_51] : memref<2x8x128xf32, #tpu.memory_space<vmem>>, vector<2x8x128xf32>
      tpu.vector_store %arg7[%c0_49, %c0_50, %c0_51], %108 {strides = array<i32>} : memref<2x8x128xf32, #tpu.memory_space<vmem>>, vector<2x8x128xf32>,
    } else {
    }
    %c0 = arith.constant 0 : index
    %c0_1 = arith.constant 0 : index
    %c0_2 = arith.constant 0 : index
    %c0_3 = arith.constant 0 : index
    %3 = vector.load %arg4[%c0, %c0_1, %c0_2, %c0_3] : memref<1x1x32x128xi8, #tpu.memory_space<vmem>>, vector<1x1x32x128xi8>
    %4 = vector.shape_cast %3 : vector<1x1x32x128xi8> to vector<32x128xi8>
    %5 = arith.sitofp %4 : vector<32x128xi8> to vector<32x128xf32>
    %c0_4 = arith.constant 0 : index
    %c0_5 = arith.constant 0 : index
    %c0_6 = arith.constant 0 : index
    %c0_7 = arith.constant 0 : index
    %6 = vector.load %arg3[%c0_4, %c0_5, %c0_6, %c0_7] : memref<1x4x32x128xbf16, #tpu.memory_space<vmem>>, vector<1x1x32x128xbf16>
    %7 = vector.shape_cast %6 : vector<1x1x32x128xbf16> to vector<32x128xbf16>
    %c0_8 = arith.constant 0 : index
    %c1 = arith.constant 1 : index
    %c0_9 = arith.constant 0 : index
    %c0_10 = arith.constant 0 : index
    %8 = vector.load %arg3[%c0_8, %c1, %c0_9, %c0_10] : memref<1x4x32x128xbf16, #tpu.memory_space<vmem>>, vector<1x1x32x128xbf16>
    %9 = vector.shape_cast %8 : vector<1x1x32x128xbf16> to vector<32x128xbf16>
    %c0_11 = arith.constant 0 : index
    %c2 = arith.constant 2 : index
    %c0_12 = arith.constant 0 : index
    %c0_13 = arith.constant 0 : index
    %10 = vector.load %arg3[%c0_11, %c2, %c0_12, %c0_13] : memref<1x4x32x128xbf16, #tpu.memory_space<vmem>>, vector<1x1x32x128xbf16>
    %11 = vector.shape_cast %10 : vector<1x1x32x128xbf16> to vector<32x128xbf16>
    %c0_14 = arith.constant 0 : index
    %c3 = arith.constant 3 : index
    %c0_15 = arith.constant 0 : index
    %c0_16 = arith.constant 0 : index
    %12 = vector.load %arg3[%c0_14, %c3, %c0_15, %c0_16] : memref<1x4x32x128xbf16, #tpu.memory_space<vmem>>, vector<1x1x32x128xbf16>
    %13 = vector.shape_cast %12 : vector<1x1x32x128xbf16> to vector<32x128xbf16>
    %14 = arith.maximumf %7, %9 : vector<32x128xbf16>
    %15 = arith.maximumf %14, %11 : vector<32x128xbf16>
    %16 = arith.maximumf %15, %13 : vector<32x128xbf16>
    %17 = arith.extf %16 : vector<32x128xbf16> to vector<32x128xf32>
    %18 = arith.extf %7 : vector<32x128xbf16> to vector<32x128xf32>
    %19 = arith.subf %18, %17 : vector<32x128xf32>
    %20 = math.exp %19 : vector<32x128xf32>
    %21 = arith.extf %9 : vector<32x128xbf16> to vector<32x128xf32>
    %22 = arith.subf %21, %17 : vector<32x128xf32>
    %23 = math.exp %22 : vector<32x128xf32>
    %24 = arith.extf %11 : vector<32x128xbf16> to vector<32x128xf32>
    %25 = arith.subf %24, %17 : vector<32x128xf32>
    %26 = math.exp %25 : vector<32x128xf32>
    %27 = arith.extf %13 : vector<32x128xbf16> to vector<32x128xf32>
    %28 = arith.subf %27, %17 : vector<32x128xf32>
    %29 = math.exp %28 : vector<32x128xf32>
    %30 = arith.addf %20, %23 : vector<32x128xf32>
    %31 = arith.addf %30, %26 : vector<32x128xf32>
    %32 = arith.addf %31, %29 : vector<32x128xf32>
    %33 = tpu.reciprocal %32 {approx = true} : vector<32x128xf32> -> vector<32x128xf32>
    %34 = arith.mulf %32, %33 : vector<32x128xf32>
    %cst = arith.constant 2.000000e+00 : f32
    %35 = vector.broadcast %cst : f32 to vector<32x128xf32>
    %36 = arith.subf %35, %34 : vector<32x128xf32>
    %37 = arith.mulf %33, %36 : vector<32x128xf32>
    %38 = arith.mulf %20, %37 : vector<32x128xf32>
    %cst_17 = arith.constant 0.000000e+00 : f32
    %39 = vector.broadcast %cst_17 : f32 to vector<32x128xf32>
    %40 = arith.cmpf oeq, %5, %39 : vector<32x128xf32>
    %41 = arith.extui %40 : vector<32x128xi1> to vector<32x128xi32>
    %42 = arith.sitofp %41 : vector<32x128xi32> to vector<32x128xf32>
    %43 = arith.mulf %38, %42 : vector<32x128xf32>
    %cst_18 = arith.constant dense<0.000000e+00> : vector<128xf32>
    %44 = vector.multi_reduction <add>, %43, %cst_18 [0] : vector<32x128xf32> to vector<128xf32>
    %45 = vector.shape_cast %44 : vector<128xf32> to vector<1x128xf32>
    %cst_19 = arith.constant dense<0.000000e+00> : vector<128xf32>
    %46 = vector.multi_reduction <add>, %38, %cst_19 [0] : vector<32x128xf32> to vector<128xf32>
    %47 = vector.shape_cast %46 : vector<128xf32> to vector<1x128xf32>
    %cst_20 = arith.constant dense<0.000000e+00> : vector<128xf32>
    %48 = vector.multi_reduction <add>, %42, %cst_20 [0] : vector<32x128xf32> to vector<128xf32>
    %49 = vector.shape_cast %48 : vector<128xf32> to vector<1x128xf32>
    %50 = arith.addf %47, %49 : vector<1x128xf32>
    %51 = arith.mulf %23, %37 : vector<32x128xf32>
    %cst_21 = arith.constant 1.000000e+00 : f32
    %52 = vector.broadcast %cst_21 : f32 to vector<32x128xf32>
    %53 = arith.cmpf oeq, %5, %52 : vector<32x128xf32>
    %54 = arith.extui %53 : vector<32x128xi1> to vector<32x128xi32>
    %55 = arith.sitofp %54 : vector<32x128xi32> to vector<32x128xf32>
    %56 = arith.mulf %51, %55 : vector<32x128xf32>
    %cst_22 = arith.constant dense<0.000000e+00> : vector<128xf32>
    %57 = vector.multi_reduction <add>, %56, %cst_22 [0] : vector<32x128xf32> to vector<128xf32>
    %58 = vector.shape_cast %57 : vector<128xf32> to vector<1x128xf32>
    %cst_23 = arith.constant dense<0.000000e+00> : vector<128xf32>
    %59 = vector.multi_reduction <add>, %51, %cst_23 [0] : vector<32x128xf32> to vector<128xf32>
    %60 = vector.shape_cast %59 : vector<128xf32> to vector<1x128xf32>
    %cst_24 = arith.constant dense<0.000000e+00> : vector<128xf32>
    %61 = vector.multi_reduction <add>, %55, %cst_24 [0] : vector<32x128xf32> to vector<128xf32>
    %62 = vector.shape_cast %61 : vector<128xf32> to vector<1x128xf32>
    %63 = arith.addf %60, %62 : vector<1x128xf32>
    %64 = arith.mulf %26, %37 : vector<32x128xf32>
    %cst_25 = arith.constant 2.000000e+00 : f32
    %65 = vector.broadcast %cst_25 : f32 to vector<32x128xf32>
    %66 = arith.cmpf oeq, %5, %65 : vector<32x128xf32>
    %67 = arith.extui %66 : vector<32x128xi1> to vector<32x128xi32>
    %68 = arith.sitofp %67 : vector<32x128xi32> to vector<32x128xf32>
    %69 = arith.mulf %64, %68 : vector<32x128xf32>
    %cst_26 = arith.constant dense<0.000000e+00> : vector<128xf32>
    %70 = vector.multi_reduction <add>, %69, %cst_26 [0] : vector<32x128xf32> to vector<128xf32>
    %71 = vector.shape_cast %70 : vector<128xf32> to vector<1x128xf32>
    %cst_27 = arith.constant dense<0.000000e+00> : vector<128xf32>
    %72 = vector.multi_reduction <add>, %64, %cst_27 [0] : vector<32x128xf32> to vector<128xf32>
    %73 = vector.shape_cast %72 : vector<128xf32> to vector<1x128xf32>
    %cst_28 = arith.constant dense<0.000000e+00> : vector<128xf32>
    %74 = vector.multi_reduction <add>, %68, %cst_28 [0] : vector<32x128xf32> to vector<128xf32>
    %75 = vector.shape_cast %74 : vector<128xf32> to vector<1x128xf32>
    %76 = arith.addf %73, %75 : vector<1x128xf32>
    %77 = arith.mulf %29, %37 : vector<32x128xf32>
    %cst_29 = arith.constant 3.000000e+00 : f32
    %78 = vector.broadcast %cst_29 : f32 to vector<32x128xf32>
    %79 = arith.cmpf oeq, %5, %78 : vector<32x128xf32>
    %80 = arith.extui %79 : vector<32x128xi1> to vector<32x128xi32>
    %81 = arith.sitofp %80 : vector<32x128xi32> to vector<32x128xf32>
    %82 = arith.mulf %77, %81 : vector<32x128xf32>
    %cst_30 = arith.constant dense<0.000000e+00> : vector<128xf32>
    %83 = vector.multi_reduction <add>, %82, %cst_30 [0] : vector<32x128xf32> to vector<128xf32>
    %84 = vector.shape_cast %83 : vector<128xf32> to vector<1x128xf32>
    %cst_31 = arith.constant dense<0.000000e+00> : vector<128xf32>
    %85 = vector.multi_reduction <add>, %77, %cst_31 [0] : vector<32x128xf32> to vector<128xf32>
    %86 = vector.shape_cast %85 : vector<128xf32> to vector<1x128xf32>
    %cst_32 = arith.constant dense<0.000000e+00> : vector<128xf32>
    %87 = vector.multi_reduction <add>, %81, %cst_32 [0] : vector<32x128xf32> to vector<128xf32>
    %88 = vector.shape_cast %87 : vector<128xf32> to vector<1x128xf32>
    %89 = arith.addf %86, %88 : vector<1x128xf32>
    %cst_33 = arith.constant 0.000000e+00 : f32
    %90 = vector.broadcast %cst_33 : f32 to vector<4x128xf32>
    %c0_34 = arith.constant 0 : index
    %c0_35 = arith.constant 0 : index
    %c0_36 = arith.constant 0 : index
    %91 = vector.load %arg7[%c0_34, %c0_35, %c0_36] : memref<2x8x128xf32, #tpu.memory_space<vmem>>, vector<1x8x128xf32>
    %92 = vector.shape_cast %91 : vector<1x8x128xf32> to vector<8x128xf32>
    %93 = tpu.concatenate %45, %58, %71, %84, %90 in 0 : vector<1x128xf32>, vector<1x128xf32>, vector<1x128xf32>, vector<1x128xf32>, vector<4x128xf32> -> vector<8x128xf32>
    %94 = arith.addf %92, %93 : vector<8x128xf32>
    %c0_37 = arith.constant 0 : index
    %c0_38 = arith.constant 0 : index
    %c0_39 = arith.constant 0 : index
    %95 = vector.load %arg7[%c0_37, %c0_38, %c0_39] : memref<2x8x128xf32, #tpu.memory_space<vmem>>, vector<1x8x128xf32>
    %96 = vector.shape_cast %95 : vector<1x8x128xf32> to vector<8x128xf32>
    %97 = vector.shape_cast %94 : vector<8x128xf32> to vector<1x8x128xf32>
    tpu.vector_store %arg7[%c0_37, %c0_38, %c0_39], %97 {strides = array<i32>} : memref<2x8x128xf32, #tpu.memory_space<vmem>>, vector<1x8x128xf32>,
    %c1_40 = arith.constant 1 : index
    %c0_41 = arith.constant 0 : index
    %c0_42 = arith.constant 0 : index
    %98 = vector.load %arg7[%c1_40, %c0_41, %c0_42] : memref<2x8x128xf32, #tpu.memory_space<vmem>>, vector<1x8x128xf32>
    %99 = vector.shape_cast %98 : vector<1x8x128xf32> to vector<8x128xf32>
    %100 = tpu.concatenate %50, %63, %76, %89, %90 in 0 : vector<1x128xf32>, vector<1x128xf32>, vector<1x128xf32>, vector<1x128xf32>, vector<4x128xf32> -> vector<8x128xf32>
    %101 = arith.addf %99, %100 : vector<8x128xf32>
    %c1_43 = arith.constant 1 : index
    %c0_44 = arith.constant 0 : index
    %c0_45 = arith.constant 0 : index
    %102 = vector.load %arg7[%c1_43, %c0_44, %c0_45] : memref<2x8x128xf32, #tpu.memory_space<vmem>>, vector<1x8x128xf32>
    %103 = vector.shape_cast %102 : vector<1x8x128xf32> to vector<8x128xf32>
    %104 = vector.shape_cast %101 : vector<8x128xf32> to vector<1x8x128xf32>
    tpu.vector_store %arg7[%c1_43, %c0_44, %c0_45], %104 {strides = array<i32>} : memref<2x8x128xf32, #tpu.memory_space<vmem>>, vector<1x8x128xf32>,
    %c0_i32_46 = arith.constant 0 : i32
    %105 = arith.cmpi eq, %arg2, %c0_i32_46 : i32
    %106 = arith.extui %105 : i1 to i32
    %c0_i32_47 = arith.constant 0 : i32
    %107 = arith.cmpi ne, %106, %c0_i32_47 : i32
    scf.if %107 {
      %c0_48 = arith.constant 0 : index
      %c0_49 = arith.constant 0 : index
      %c0_50 = arith.constant 0 : index
      %108 = vector.load %arg7[%c0_48, %c0_49, %c0_50] : memref<2x8x128xf32, #tpu.memory_space<vmem>>, vector<1x4x128xf32>
      %109 = vector.shape_cast %108 : vector<1x4x128xf32> to vector<4x128xf32>
      %cst_51 = arith.constant dense<0.000000e+00> : vector<4xf32>
      %110 = vector.multi_reduction <add>, %109, %cst_51 [1] : vector<4x128xf32> to vector<4xf32>
      %111 = vector.shape_cast %110 : vector<4xf32> to vector<1x1x4xf32>
      %c0_52 = arith.constant 0 : index
      %c0_53 = arith.constant 0 : index
      %c0_54 = arith.constant 0 : index
      %112 = vector.load %arg5[%c0_52, %c0_53, %c0_54] : memref<1x1x4xf32, #tpu.memory_space<vmem>>, vector<1x1x4xf32>
      tpu.vector_store %arg5[%c0_52, %c0_53, %c0_54], %111 {strides = array<i32>} : memref<1x1x4xf32, #tpu.memory_space<vmem>>, vector<1x1x4xf32>,
      %c1_55 = arith.constant 1 : index
      %c0_56 = arith.constant 0 : index
      %c0_57 = arith.constant 0 : index
      %113 = vector.load %arg7[%c1_55, %c0_56, %c0_57] : memref<2x8x128xf32, #tpu.memory_space<vmem>>, vector<1x4x128xf32>
      %114 = vector.shape_cast %113 : vector<1x4x128xf32> to vector<4x128xf32>
      %cst_58 = arith.constant dense<0.000000e+00> : vector<4xf32>
      %115 = vector.multi_reduction <add>, %114, %cst_58 [1] : vector<4x128xf32> to vector<4xf32>
      %116 = vector.shape_cast %115 : vector<4xf32> to vector<1x1x4xf32>
      %c0_59 = arith.constant 0 : index
      %c0_60 = arith.constant 0 : index
      %c0_61 = arith.constant 0 : index
      %117 = vector.load %arg6[%c0_59, %c0_60, %c0_61] : memref<1x1x4xf32, #tpu.memory_space<vmem>>, vector<1x1x4xf32>
      tpu.vector_store %arg6[%c0_59, %c0_60, %c0_61], %116 {strides = array<i32>} : memref<1x1x4xf32, #tpu.memory_space<vmem>>, vector<1x1x4xf32>,
    } else {
    }
    return
  }
  func.func @transform_0(%arg0: i32, %arg1: i32, %arg2: i32) -> (i32, i32, i32, i32) {
    %c1_i32 = arith.constant 1 : i32
    %0 = arith.muli %arg0, %c1_i32 : i32
    %1 = arith.addi %0, %arg2 : i32
    %c0_i32 = arith.constant 0 : i32
    %c0_i32_0 = arith.constant 0 : i32
    %c0_i32_1 = arith.constant 0 : i32
    return %arg1, %c0_i32, %1, %c0_i32_0 : i32, i32, i32, i32
  }
  func.func @transform_1(%arg0: i32, %arg1: i32, %arg2: i32) -> (i32, i32, i32, i32) {
    %c1_i32 = arith.constant 1 : i32
    %0 = arith.muli %arg0, %c1_i32 : i32
    %1 = arith.addi %0, %arg2 : i32
    %c0_i32 = arith.constant 0 : i32
    %c0_i32_0 = arith.constant 0 : i32
    %c0_i32_1 = arith.constant 0 : i32
    return %arg1, %c0_i32, %1, %c0_i32_0 : i32, i32, i32, i32
  }
  func.func @transform_2(%arg0: i32, %arg1: i32, %arg2: i32) -> (i32, i32, i32) {
    %c2_i32 = arith.constant 2 : i32
    %0 = arith.muli %arg0, %c2_i32 : i32
    %1 = arith.addi %0, %arg1 : i32
    %c0_i32 = arith.constant 0 : i32
    %c0_i32_0 = arith.constant 0 : i32
    %c0_i32_1 = arith.constant 0 : i32
    return %1, %c0_i32, %c0_i32_0 : i32, i32, i32
  }
  func.func @transform_3(%arg0: i32, %arg1: i32, %arg2: i32) -> (i32, i32, i32) {
    %c2_i32 = arith.constant 2 : i32
    %0 = arith.muli %arg0, %c2_i32 : i32
    %1 = arith.addi %0, %arg1 : i32
    %c0_i32 = arith.constant 0 : i32
    %c0_i32_0 = arith.constant 0 : i32
    %c0_i32_1 = arith.constant 0 : i32
    return %1, %c0_i32, %c0_i32_0 : i32, i32, i32
  }
}

</mosaic_0001>

<bundles_post_ra>
// kernel: tpu_custom_call.1
= control target key start
LH: loop header
LB: loop body
LE: loop exit
PB: predicated region body
PF: predicated region fallthrough
CT: control target
= control target key end

     0   :  { %s1612_s0 = inlined_call_operand.hbm [shape: bf16[2,4,32,128], index: 0, kind: input, shape index: {}]   ;;  %s1613_s1 = inlined_call_operand.hbm [shape: s8[2,1,32,128], index: 1, kind: input, shape index: {}]   ;;  %s1614_s2 = inlined_call_operand.hbm [shape: f32[2,1,4], index: 2, kind: output, shape index: {0}]   ;;  %s1615_s3 = inlined_call_operand.hbm [shape: f32[2,1,4], index: 3, kind: output, shape index: {1}]  }
   0x1   :  { %1616 = sst [smem:[#allocation15_spill]] %s1612_s0 }
   0x2   :  { %9 = vsyncpa [#allocation4], 0 }
   0x3   :  { %11 = vsyncpa [#allocation4 + $0x1], 0 }
   0x4   :  { %12 = vsyncpa [#allocation7], 0 }
   0x5   :  { %14 = vsyncpa [#allocation7 + $0x1], 0 }
   0x6   :  { %15 = vsyncpa [#allocation5], 0 }
   0x7   :  { %17 = vsyncpa [#allocation5 + $0x1], 0 }
   0x8   :  { %18 = vsyncpa [#allocation10], 0 }
   0x9   :  { %20 = vsyncpa [#allocation10 + $0x1], 0  ;;  %s1194_s12 = smov 0   ;;  %s1196_s13 = smov 0  }
   0xa   :  { %s1198_s14 = smov 0   ;;  %s1200_s15 = smov 0  }
   0xb   :  { %s1202_s16 = smov 0   ;;  %s1204_s17 = smov 0  }
   0xc LB: > { %s835_s18 = sadd.s32 4294967295, %s1165_s17   ;;  %s836_s19 = sadd.s32 4294967294, %s1165_s17   ;;  %s1165_s17 = sphi %s1204_s17, %s26_s17   ;;  %s1161_s16 = sphi %s1202_s16, %s1629_s16   ;;  %s1157_s15 = sphi %s1200_s15, %s1628_s15   ;;  %s1153_s14 = sphi %s1198_s14, %s1627_s14   ;;  %s1149_s13 = sphi %s1196_s13, %s1626_s13   ;;  %s1145_s12 = sphi %s1194_s12, %s1625_s12  }
   0xd   : > { %s41_s20 = sadd.s32 1, %s1161_s16  ;;  %s56_s21 = sadd.s32 1, %s1153_s14 }
   0xe   : > { %p43_p0 = scmp.ge.s32.totalorder %s41_s20, 2  ;;  %p63_p1 = scmp.ne.s32.totalorder %s1153_s14, %s1149_s13 }
   0xf   : > { %p64_p2 = scmp.eq.s32.totalorder %s1165_s17, 0  ;;  %p69_p3 = scmp.ne.s32.totalorder %s1149_s13, %s1145_s12 }
  0x10   : > { %s1631_s20 = smov (%p43_p0, %s41_s20), 0  ;;  %p70_p5 = scmp.eq.s32.totalorder %s835_s18, 0 }
  0x11   : > { %p1235_p4 = por %p64_p2, %p63_p1  ;;  %s51_s23 = ssub.s32 %s1161_s16, %s1631_s20 }
  0x12   : > { %p127_p6 = scmp.eq.s32.totalorder %s835_s18, 1  ;;  %p54_p7 = scmp.eq.s32.totalorder %s51_s23, 0 }
  0x13   : > { %p1241_p8 = por %p70_p5, %p69_p3  ;;  %p133_p10 = scmp.eq.s32.totalorder %s836_s19, 1 }
  0x14   : > { %p1245_p9 = por %p127_p6, %p63_p1  ;;  %p902_p13 = scmp.lt.s32.totalorder %s1165_s17, 2 }
  0x15   : > { %s1250_s26 = scalar_select %p54_p7, %s1153_s14, %s56_s21  }
  0x16   : > { %p1252_p11 = por %p133_p10, %p69_p3  ;;  %s1259_s28 = sand.u32 1, %s1153_s14  }
  0x17   : > { %s839_s29 = sshll.u32 %s1259_s28, 6  ;;  %s879_s30 = sshll.u32 %s1161_s16, 10 }
  0x18   : > { %s1621_s0 = sld [smem:[#allocation15_spill]]  ;;  %s187_s7 = scalar_lea.vmem [#allocation3], %s839_s29 }
  0x19   : > { %s197_s8 = sshll.u32 %s187_s7, 4  ;;  %p1268_p0 = pnand %p902_p13, %p1235_p4  ;;  %s198_s8 = int_to_ptr.vmem [resolvable:$true] %s197_s8 }
  0x1a   : > { %p844_p1 = scmp.ge.s32.totalorder %s1165_s17, 1  ;;  %s184_s10 = scalar_lea.sflag [#allocation4], %s1259_s28 }
  0x1b   : > { %p997_p2 = pneg %p1268_p0  ;;  %s1008_s11 = scalar_lea.vmem %s198_s8, 1024 }
  0x1c   : > { %p1009_p3 = scmp.ne.s32.totalorder %s198_s8, %s1008_s11  ;;  %s1167_s18 = smov [#allocation3]  }
  0x1d   : > { %s1013_s19 = sshll.u32 %s1167_s18, 4  ;;  %s1014_s19 = int_to_ptr.vmem [resolvable:$false] %s1013_s19 }
  0x1e   : > { %s196_s6 = scalar_lea.hbm %s1621_s0, %s879_s30  ;;  %p1011_p5 = pnand %p1009_p3, %p997_p2 }
  0x1f   : > { %s1015_s21 = scalar_lea.vmem %s1014_s19, 2048  ;;  %p1016_p4 = scmp.lt.s32.totalorder %s198_s8, %s1014_s19 }
  0x20   : > { %p1012_p6 = pneg %p1011_p5  ;;  %p1017_p7 = scmp.lt.s32.totalorder %s1015_s21, %s1008_s11 }
  0x22   : > { %p1018_p10 = por %p1017_p7, %p1016_p4 }
  0x24   : > { %p1019_p13 = pnand %p1018_p10, %p1012_p6 }
  0x26   : > { %1022 = shalt.err (!%p1019_p13)
}
  0x27   : > { %s1168_s22 = smov 64   ;;  %s1169_s23 = smov 4  }
  0x28   : > { %891 = dma.hbm_to_vmem [thread:$0]  (!%p1268_p0), %s196_s6, 1024, %s198_s8, %s184_s10, %s1168_s22, %s1168_s22, %s1169_s23  }
  0x29   : > { %p225_p3 = scmp.lt.s32.totalorder %s1165_s17, 3  ;;  %s842_s29 = sshll.u32 %s1259_s28, 3 }
  0x2a   : > { %s843_s30 = sshll.u32 %s1161_s16, 7  ;;  %s211_s18 = scalar_lea.vmem [#allocation6], %s842_s29 }
  0x2b   : > { %p1286_p5 = pnand %p844_p1, %p225_p3  ;;  %s218_s11 = scalar_lea.hbm %s1613_s1, %s843_s30 }
  0x2c   : > { %s220_s19 = sshll.u32 %s211_s18, 4  ;;  %s208_s21 = scalar_lea.sflag [#allocation7], %s1259_s28  ;;  %s221_s19 = int_to_ptr.vmem [resolvable:$true] %s220_s19 }
  0x2d   : > { %s1036_s0 = scalar_lea.vmem %s221_s19, 128  ;;  %s1170_s6 = smov [#allocation6]  }
  0x2e   : > { %p1037_p6 = scmp.ne.s32.totalorder %s221_s19, %s1036_s0  ;;  %s1041_s8 = sshll.u32 %s1170_s6, 4  ;;  %s1042_s8 = int_to_ptr.vmem [resolvable:$false] %s1041_s8 }
  0x2f   : > { %s1043_s10 = scalar_lea.vmem %s1042_s8, 256  ;;  %p1044_p1 = scmp.lt.s32.totalorder %s221_s19, %s1042_s8 }
  0x30   : > { %p1039_p4 = pnand %p1037_p6, %p997_p2  ;;  %p1045_p10 = scmp.lt.s32.totalorder %s1043_s10, %s1036_s0 }
  0x32   : > { %p1040_p7 = pneg %p1039_p4  ;;  %p1046_p13 = por %p1045_p10, %p1044_p1 }
  0x34   : > { %p1047_p3 = pnand %p1046_p13, %p1040_p7 }
  0x36   : > { %1050 = shalt.err (!%p1047_p3)
}
  0x37   : > { %894 = dma.hbm_to_vmem [thread:$0]  (!%p1268_p0), %s218_s11, 128, %s221_s19, %s208_s21  }
  0x38   : > { %229 = sbr.rel (%p1286_p5) target bundleno = 350 (0x15e), region = 28  ;;  %s1302_s28 = sand.u32 (!%p1286_p5), 1, %s1149_s13  }
  0x39   : > { %s845_s22 = sshll.u32 (!%p1286_p5), %s1302_s28, 6  ;;  %s232_s23 = scalar_lea.sflag (!%p1286_p5), [#allocation4], %s1302_s28 }
  0x3a   : > { %s235_s29 = scalar_lea.vmem (!%p1286_p5), [#allocation3], %s845_s22 }
  0x3d   : > { %1128 = dma.done.wait (%p1241_p8), %s232_s23, 1024  }
  0x3e   : > { %1130 = vsyncadd (%p1241_p8), %s232_s23, 4294966272  ;;  %s846_s0 = sshll.u32 %s1302_s28, 3  ;;  %s241_s9 = scalar_lea.sflag [#allocation7], %s1302_s28 }
  0x3f   : > { %s1312_s30 = scalar_lea.vmem [#allocation6], %s846_s0 }
  0x40   : > { %1132 = dma.done.wait (%p1241_p8), %s241_s9, 128  }
  0x41   : > { %1134 = vsyncadd (%p1241_p8), %s241_s9, 4294967168  ;;  %v297_v0 = vld [vmem:[%s235_s29] sm:$0xf]  ;;  %v298_v1 = vld [vmem:[%s235_s29 + $0x4] sm:$0xf]  ;;  %s875_s24 = sshll.u32 %s1157_s15, 4 }
  0x42   : > { %v299_v2 = vld [vmem:[%s235_s29 + $0x8] sm:$0xf]  ;;  %v300_v3 = vld [vmem:[%s235_s29 + $0xc] sm:$0xf]  ;;  %v847_v4 = vld [vmem:[%s235_s29 + $0x10] sm:$0xf]  ;;  %v332_v21 = vunpack.c.l.bf16 %v297_v0  ;;  %v333_v22 = vunpack.c.l.bf16 %v298_v1  ;;  %s1536_s18 = scalar_lea.hbm %s1614_s2, %s875_s24 }
  0x43   : > { %v848_v5 = vld [vmem:[%s235_s29 + $0x14] sm:$0xf]  ;;  %v849_v6 = vld [vmem:[%s235_s29 + $0x18] sm:$0xf]  ;;  %v850_v7 = vld [vmem:[%s235_s29 + $0x1c] sm:$0xf]  ;;  %v316_v8 = vmax.bf16 %v847_v4, %v297_v0  ;;  %v334_v23 = vunpack.c.l.bf16 %v299_v2  ;;  %v335_v28 = vunpack.c.l.bf16 %v300_v3  ;;  %v348_v29 = vunpack.c.l.bf16 %v847_v4 }
  0x44   : > { %v851_v9 = vld [vmem:[%s235_s29 + $0x20] sm:$0xf]  ;;  %v852_v10 = vld [vmem:[%s235_s29 + $0x24] sm:$0xf]  ;;  %v853_v11 = vld [vmem:[%s235_s29 + $0x28] sm:$0xf]  ;;  %v317_v14 = vmax.bf16 %v848_v5, %v298_v1  ;;  %v318_v15 = vmax.bf16 %v849_v6, %v299_v2  ;;  %v319_v16 = vmax.bf16 %v850_v7, %v300_v3  ;;  %v349_v30 = vunpack.c.l.bf16 %v848_v5 }
  0x45   : > { %v854_v12 = vld [vmem:[%s235_s29 + $0x2c] sm:$0xf]  ;;  %v1318_v13 = vld [vmem:[%s235_s29 + $0x30] sm:$0xf]  ;;  %v320_v17 = vmax.bf16 %v851_v9, %v316_v8  ;;  %v1320_v18 = vld [vmem:[%s235_s29 + $0x34] sm:$0xf]  ;;  %v364_v31 = vunpack.c.l.bf16 %v851_v9  ;;  %v350_v36 = vunpack.c.l.bf16 %v849_v6  ;;  %v351_v37 = vunpack.c.l.bf16 %v850_v7 }
  0x46   : > { %v1322_v19 = vld [vmem:[%s235_s29 + $0x38] sm:$0xf]  ;;  %v1324_v20 = vld [vmem:[%s235_s29 + $0x3c] sm:$0xf]  ;;  %v321_v24 = vmax.bf16 %v852_v10, %v317_v14  ;;  %v322_v25 = vmax.bf16 %v853_v11, %v318_v15  ;;  %v323_v26 = vmax.bf16 %v854_v12, %v319_v16  ;;  %v365_v38 = vunpack.c.l.bf16 %v852_v10  ;;  %v288_v59 = vld [vmem:[%s1312_s30] sm:$0xff]  ;;  %s268_s4 = scalar_lea.vmem [#allocation8], %s1302_s28 }
  0x47   : > { %v324_v27 = vmax.bf16 %v1318_v13, %v320_v17  ;;  %v366_v39 = vunpack.c.l.bf16 %v853_v11  ;;  %v367_v45 = vunpack.c.l.bf16 %v854_v12  ;;  %v380_v47 = vunpack.c.l.bf16 %v1318_v13  ;;  %s682_s5 = sshll.u32 %s268_s4, 4  ;;  %s274_s19 = scalar_lea.vmem [#allocation9], %s1302_s28  ;;  %s1538_s5 = int_to_ptr.vmem [resolvable:$true] %s682_s5 }
  0x48   : > { %v325_v32 = vmax.bf16 %v1320_v18, %v321_v24  ;;  %v326_v33 = vmax.bf16 %v1322_v19, %v322_v25  ;;  %v327_v34 = vmax.bf16 %v1324_v20, %v323_v26  ;;  %v381_v61 = vunpack.c.l.bf16 %v1320_v18  ;;  %s1543_s21 = sshll.u32 %s274_s19, 4  ;;  %s664_s6 = scalar_lea.sflag [#allocation5], %s1302_s28  ;;  %s698_s21 = int_to_ptr.vmem [resolvable:$true] %s1543_s21 }
  0x49   : > { %v328_v35 = vunpack.c.l.bf16 %v324_v27  ;;  %v382_v62 = vunpack.c.l.bf16 %v1322_v19  ;;  %v383_v4 = vunpack.c.l.bf16 %v1324_v20  ;;  %v289_v5 = vunpack.c.0.s8 %v288_v59  ;;  %s1051_s8 = scalar_lea.vmem %s1538_s5, 16  ;;  %s1172_s10 = smov [#allocation8]  }
  0x4a   : > { %v329_v40 = vunpack.c.l.bf16 %v325_v32  ;;  %v330_v41 = vunpack.c.l.bf16 %v326_v33  ;;  %v331_v42 = vunpack.c.l.bf16 %v327_v34  ;;  %v290_v8 = vunpack.c.1.s8 %v288_v59  ;;  %p1052_p8 = scmp.ne.s32.totalorder %s1538_s5, %s1051_s8  ;;  %s1055_s22 = sshll.u32 %s1172_s10, 4  ;;  %s1056_s22 = int_to_ptr.vmem [resolvable:$false] %s1055_s22 }
  0x4b   : > { %v336_v43 = vsub.f32 %v332_v21, %v328_v35  ;;  %v352_v44 = vsub.f32 %v348_v29, %v328_v35  ;;  %v368_v46 = vsub.f32 %v364_v31, %v328_v35  ;;  %v384_v7 = vsub.f32 %v380_v47, %v328_v35  ;;  %s1057_s23 = scalar_lea.vmem %s1056_s22, 32  ;;  %p1058_p5 = scmp.lt.s32.totalorder %s1538_s5, %s1056_s22 }
  0x4c   : > { %v337_v48 = vsub.f32 %v333_v22, %v329_v40  ;;  %v338_v49 = vsub.f32 %v334_v23, %v330_v41  ;;  %v339_v50 = vsub.f32 %v335_v28, %v331_v42  ;;  %v353_v52 = vsub.f32 %v349_v30, %v329_v40  ;;  %p1053_p0 = pnand %p1052_p8, %p1245_p9  ;;  %p1059_p6 = scmp.lt.s32.totalorder %s1057_s23, %s1051_s8 }
  0x4d   : > { %v340_v51 = vmul.f32 1.442695, %v336_v43  ;;  %v354_v53 = vsub.f32 %v350_v36, %v330_v41  ;;  %v355_v54 = vsub.f32 %v351_v37, %v331_v42  ;;  %v356_v55 = vmul.f32 1.442695, %v352_v44 }
  0x4e   : > { %v342_v56 = vmul.f32 1.442695, %v337_v48  ;;  %v344_v57 = vmul.f32 1.442695, %v338_v49  ;;  %v346_v58 = vmul.f32 1.442695, %v339_v50  ;;  %v369_v0 = vsub.f32 %v365_v38, %v329_v40  ;;  %p1054_p2 = pneg %p1053_p0  ;;  %p1060_p4 = por %p1059_p6, %p1058_p5 }
  0x4f   : > { %955 = vpow2.f32 %v340_v51  ;;  %v358_v60 = vmul.f32 1.442695, %v353_v52  ;;  %v360_v63 = vmul.f32 1.442695, %v354_v53  ;;  %v370_v1 = vsub.f32 %v366_v39, %v330_v41 }
  0x50   : > { %957 = vpow2.f32 %v356_v55  ;;  %v362_v2 = vmul.f32 1.442695, %v355_v54  ;;  %v371_v3 = vsub.f32 %v367_v45, %v331_v42  ;;  %v372_v6 = vmul.f32 1.442695, %v368_v46  ;;  %p1061_p7 = pnand %p1060_p4, %p1054_p2 }
  0x51   : > { %959 = vpow2.f32 %v342_v56  ;;  %v374_v9 = vmul.f32 1.442695, %v369_v0  ;;  %v385_v10 = vsub.f32 %v381_v61, %v329_v40  ;;  %v376_v11 = vmul.f32 1.442695, %v370_v1 }
  0x52   : > { %961 = vpow2.f32 %v344_v57  ;;  %v386_v12 = vsub.f32 %v382_v62, %v330_v41  ;;  %v378_v13 = vmul.f32 1.442695, %v371_v3  ;;  %v387_v14 = vsub.f32 %v383_v4, %v331_v42 }
  0x53   : > { %963 = vpow2.f32 %v346_v58  ;;  %v291_v15 = vunpack.c.2.s8 %v288_v59  ;;  %v388_v16 = vmul.f32 1.442695, %v384_v7  ;;  %v1335_v17 = vcvt.s32.f32 %v289_v5 }
  0x54   : > { %965 = vpow2.f32 %v358_v60  ;;  %v1337_v18 = vcvt.s32.f32 %v290_v8  ;;  %v390_v19 = vmul.f32 1.442695, %v385_v10  ;;  %v392_v20 = vmul.f32 1.442695, %v386_v12 }
  0x55   : > { %967 = vpow2.f32 %v360_v63  ;;  %v394_v21 = vmul.f32 1.442695, %v387_v14  ;;  %v292_v22 = vunpack.c.3.s8 %v288_v59  ;;  %v1341_v24 = vcvt.s32.f32 %v291_v15 }
  0x56   : > { %969 = vpow2.f32 %v362_v2  ;;  %vm428_vm0 = vcmp.eq.f32.partialorder %v1335_v17, 0.0  ;;  %vm429_vm1 = vcmp.eq.f32.partialorder %v1337_v18, 0.0  ;;  %v1171_v29 = vmov 0.0  }
  0x57   : > { %971 = vpow2.f32 %v372_v6  ;;  %v1351_v28 = vcvt.s32.f32 %v292_v22  ;;  %v1354_v30 = vsel %vm428_vm0, 1.0, %v1171_v29  ;;  %v1357_v31 = vsel %vm429_vm1, 1.0, %v1171_v29 }
  0x58   : > { %973 = vpow2.f32 %v374_v9  ;;  %vm430_vm2 = vcmp.eq.f32.partialorder %v1341_v24, 0.0  ;;  %v462_v33 = vadd.f32 %v1357_v31, %v1354_v30  ;;  %vm476_vm3 = vcmp.eq.f32.partialorder %v1335_v17, 1.0 }
  0x59   : > { %975 = vpow2.f32 %v376_v11  ;;  %vm477_vm4 = vcmp.eq.f32.partialorder %v1337_v18, 1.0  ;;  %vm431_vm5 = vcmp.eq.f32.partialorder %v1351_v28, 0.0  ;;  %v1380_v40 = vsel %vm430_vm2, 1.0, %v1171_v29 }
  0x5a   : > { %977 = vpow2.f32 %v378_v13  ;;  %v463_v43 = vadd.f32 %v1380_v40, %v462_v33  ;;  %v1388_v44 = vsel %vm476_vm3, 1.0, %v1171_v29  ;;  %v1391_v45 = vsel %vm477_vm4, 1.0, %v1171_v29 }
  0x5b   : > { %979 = vpow2.f32 %v388_v16  ;;  %vm478_vm6 = vcmp.eq.f32.partialorder %v1341_v24, 1.0  ;;  %v510_v48 = vadd.f32 %v1391_v45, %v1388_v44  ;;  %vm524_vm7 = vcmp.eq.f32.partialorder %v1335_v17, 2.0 }
  0x5c   : > { %v1339_v23 = vpop.eup %955  ;;  %981 = vpow2.f32 %v390_v19  ;;  %vm525_vm8 = vcmp.eq.f32.partialorder %v1337_v18, 2.0  ;;  %v1410_v53 = vsel %vm431_vm5, 1.0, %v1171_v29  ;;  %vm479_vm9 = vcmp.eq.f32.partialorder %v1351_v28, 1.0 }
  0x5d   : > { %v1345_v25 = vpop.eup %957  ;;  %983 = vpow2.f32 %v392_v20  ;;  %v464_v56 = vadd.f32 %v1410_v53, %v463_v43  ;;  %v1418_v57 = vsel %vm478_vm6, 1.0, %v1171_v29  ;;  %v1425_v61 = vsel %vm524_vm7, 1.0, %v1171_v29 }
  0x5e   : > { %v1347_v26 = vpop.eup %959  ;;  %985 = vpow2.f32 %v394_v21  ;;  %v396_v35 = vadd.f32 %v1345_v25, %v1339_v23  ;;  %v511_v60 = vadd.f32 %v1418_v57, %v510_v48  ;;  %v1428_v62 = vsel %vm525_vm8, 1.0, %v1171_v29 }
  0x5f   : > { %v1349_v27 = vpop.eup %961  ;;  %vm526_vm10 = vcmp.eq.f32.partialorder %v1341_v24, 2.0  ;;  %v558_v1 = vadd.f32 %v1428_v62, %v1425_v61  ;;  %v1443_v5 = vsel %vm479_vm9, 1.0, %v1171_v29  ;;  %vm527_vm11 = vcmp.eq.f32.partialorder %v1351_v28, 2.0 }
  0x60   : > { %v1359_v32 = vpop.eup %963  ;;  %v465_v6 = vrot.slane %v464_v56, 4  ;;  %v512_v7 = vadd.f32 %v1443_v5, %v511_v60  ;;  %v1448_v8 = vsel %vm526_vm10, 1.0, %v1171_v29  ;;  %vm572_vm12 = vcmp.eq.f32.partialorder %v1335_v17, 3.0 }
  0x61   : > { %v1364_v34 = vpop.eup %965  ;;  %v559_v9 = vadd.f32 %v1448_v8, %v558_v1  ;;  %vm573_vm13 = vcmp.eq.f32.partialorder %v1337_v18, 3.0  ;;  %v1454_v10 = vsel %vm527_vm11, 1.0, %v1171_v29  ;;  %v1457_v13 = vsel %vm572_vm12, 1.0, %v1171_v29 }
  0x62   : > { %v1370_v36 = vpop.eup %967  ;;  %v397_v37 = vadd.f32 %v1364_v34, %v1347_v26  ;;  %v466_v11 = vadd.f32 %v465_v6, %v464_v56  ;;  %v513_v12 = vrot.slane %v512_v7, 4  ;;  %v1460_v14 = vsel %vm573_vm13, 1.0, %v1171_v29 }
  0x63   : > { %v1374_v38 = vpop.eup %969  ;;  %v398_v39 = vadd.f32 %v1370_v36, %v1349_v27  ;;  %v560_v15 = vadd.f32 %v1454_v10, %v559_v9  ;;  %vm574_vm14 = vcmp.eq.f32.partialorder %v1341_v24, 3.0  ;;  %v606_v16 = vadd.f32 %v1460_v14, %v1457_v13 }
  0x64   : > { %v1382_v41 = vpop.eup %971  ;;  %v399_v42 = vadd.f32 %v1374_v38, %v1359_v32  ;;  %v467_v17 = vrot.slane %v466_v11, 2  ;;  %v514_v18 = vadd.f32 %v513_v12, %v512_v7  ;;  %v1467_v19 = vsel %vm574_vm14, 1.0, %v1171_v29 }
  0x65   : > { %v1393_v46 = vpop.eup %973  ;;  %v400_v47 = vadd.f32 %v1382_v41, %v396_v35  ;;  %v561_v20 = vrot.slane %v560_v15, 4  ;;  %vm575_vm15 = vcmp.eq.f32.partialorder %v1351_v28, 3.0  ;;  %v607_v21 = vadd.f32 %v1467_v19, %v606_v16 }
  0x66   : > { %v1399_v49 = vpop.eup %975  ;;  %v401_v50 = vadd.f32 %v1393_v46, %v397_v37  ;;  %v1471_v37 = vadd.f32 %v467_v17, %v466_v11  ;;  %v1474_v24 = vsel %vm575_vm15, 1.0, %v1171_v29  ;;  %vm617_vm0 = vcmask 1040384  }
  0x67   : > { %v1404_v51 = vpop.eup %977  ;;  %v402_v52 = vadd.f32 %v1399_v49, %v398_v39  ;;  %v515_v39 = vrot.slane %v514_v18, 2  ;;  %v1479_v48 = vadd.f32 %v1474_v24, %v607_v21  ;;  %vm619_vm1 = vcmask 1041408  }
  0x68   : > { %v1412_v54 = vpop.eup %979  ;;  %v403_v55 = vadd.f32 %v1404_v51, %v399_v42  ;;  %v469_v1 = vrot.slane %v1471_v37, 1  ;;  %vm621_vm2 = vcmask 1042432   ;;  %vm623_vm3 = vcmask 1043456  }
  0x69   : > { %v1420_v58 = vpop.eup %981  ;;  %v404_v59 = vadd.f32 %v1412_v54, %v400_v47  ;;  %v1476_v47 = vadd.f32 %v561_v20, %v560_v15  ;;  %v1482_v6 = vadd.f32 %v515_v39, %v514_v18  ;;  %v609_v9 = vrot.slane %v1479_v48, 4 }
  0x6a   : > { %v1430_v63 = vpop.eup %983  ;;  %v405_v0 = vadd.f32 %v1420_v58, %v401_v50  ;;  %vm650_vm4 = vcmask 24576  }
  0x6b   : > { %v1436_v2 = vpop.eup %985  ;;  %v406_v3 = vadd.f32 %v1430_v63, %v402_v52  ;;  %987 = vrcp.f32 %v404_v59 }
  0x6c   : > { %v407_v4 = vadd.f32 %v1436_v2, %v403_v55  ;;  %989 = vrcp.f32 %v405_v0 }
  0x6d   : > { %991 = vrcp.f32 %v406_v3 }
  0x6e   : > { %993 = vrcp.f32 %v407_v4 }
  0x78   : > { %v988_v22 = vpop.eup %987 }
  0x79   : > { %v990_v33 = vpop.eup %989  ;;  %v412_v35 = vmul.f32 %v988_v22, %v404_v59 }
  0x7a   : > { %v992_v42 = vpop.eup %991  ;;  %v413_v43 = vmul.f32 %v990_v33, %v405_v0  ;;  %v563_v0 = vrot.slane %v1476_v47, 2 }
  0x7b   : > { %v994_v50 = vpop.eup %993  ;;  %v414_v28 = vmul.f32 %v992_v42, %v406_v3  ;;  %v416_v52 = vsub.f32 2.0, %v412_v35 }
  0x7c   : > { %v415_v55 = vmul.f32 %v994_v50, %v407_v4  ;;  %v417_v56 = vsub.f32 2.0, %v413_v43 }
  0x7d   : > { %v418_v60 = vsub.f32 2.0, %v414_v28  ;;  %v420_v59 = vmul.f32 %v988_v22, %v416_v52 }
  0x7e   : > { %v419_v29 = vsub.f32 2.0, %v415_v55  ;;  %v421_v7 = vmul.f32 %v990_v33, %v417_v56 }
  0x7f   : > { %v422_v11 = vmul.f32 %v992_v42, %v418_v60  ;;  %v424_v12 = vmul.f32 %v1339_v23, %v420_v59  ;;  %v472_v3 = vmul.f32 %v1345_v25, %v420_v59  ;;  %v520_v4 = vmul.f32 %v1382_v41, %v420_v59 }
  0x80   : > { %v423_v15 = vmul.f32 %v994_v50, %v419_v29  ;;  %v425_v16 = vmul.f32 %v1347_v26, %v421_v7  ;;  %v473_v17 = vmul.f32 %v1364_v34, %v421_v7  ;;  %v521_v18 = vmul.f32 %v1393_v46, %v421_v7 }
  0x81   : > { %v426_v20 = vmul.f32 %v1349_v27, %v422_v11  ;;  %v440_v21 = vmul.f32 %v1354_v30, %v424_v12  ;;  %v474_v22 = vmul.f32 %v1370_v36, %v422_v11  ;;  %v488_v33 = vmul.f32 %v1388_v44, %v472_v3 }
  0x82   : > { %v427_v23 = vmul.f32 %v1359_v32, %v423_v15  ;;  %v441_v25 = vmul.f32 %v1357_v31, %v425_v16  ;;  %v453_v41 = vadd.f32 %v425_v16, %v424_v12  ;;  %v475_v35 = vmul.f32 %v1374_v38, %v423_v15 }
  0x83   : > { %v442_v26 = vmul.f32 %v1380_v40, %v426_v20  ;;  %v489_v34 = vmul.f32 %v1391_v45, %v473_v17  ;;  %v490_v46 = vmul.f32 %v1418_v57, %v474_v22  ;;  %v501_v27 = vadd.f32 %v473_v17, %v472_v3 }
  0x84   : > { %v443_v30 = vmul.f32 %v1410_v53, %v427_v23  ;;  %v444_v39 = vadd.f32 %v441_v25, %v440_v21  ;;  %v454_v36 = vadd.f32 %v453_v41, %v426_v20  ;;  %v491_v44 = vmul.f32 %v1443_v5, %v475_v35 }
  0x85   : > { %v492_v42 = vadd.f32 %v489_v34, %v488_v33  ;;  %v502_v32 = vadd.f32 %v501_v27, %v474_v22  ;;  %v522_v31 = vmul.f32 %v1399_v49, %v422_v11  ;;  %v523_v43 = vmul.f32 %v1404_v51, %v423_v15 }
  0x86   : > { %v445_v38 = vadd.f32 %v444_v39, %v442_v26  ;;  %v455_v50 = vadd.f32 %v454_v36, %v427_v23  ;;  %v536_v40 = vmul.f32 %v1425_v61, %v520_v4  ;;  %v537_v45 = vmul.f32 %v1428_v62, %v521_v18 }
  0x87   : > { %v493_v57 = vadd.f32 %v492_v42, %v490_v46  ;;  %v503_v28 = vadd.f32 %v502_v32, %v475_v35  ;;  %v538_v53 = vmul.f32 %v1448_v8, %v522_v31  ;;  %v539_v52 = vmul.f32 %v1454_v10, %v523_v43 }
  0x88   : > { %v446_v55 = vadd.f32 %v445_v38, %v443_v30  ;;  %v456_v5 = vrot.slane %v455_v50, 4  ;;  %v540_v56 = vadd.f32 %v537_v45, %v536_v40  ;;  %v549_v60 = vadd.f32 %v521_v18, %v520_v4 }
  0x89   : > { %v494_v29 = vadd.f32 %v493_v57, %v491_v44  ;;  %v504_v49 = vrot.slane %v503_v28, 4  ;;  %v568_v51 = vmul.f32 %v1412_v54, %v420_v59  ;;  %v569_v12 = vmul.f32 %v1420_v58, %v421_v7 }
  0x8a   : > { %v447_v3 = vrot.slane %v446_v55, 4  ;;  %v457_v61 = vadd.f32 %v456_v5, %v455_v50  ;;  %v541_v16 = vadd.f32 %v540_v56, %v538_v53  ;;  %v550_v62 = vadd.f32 %v549_v60, %v522_v31 }
  0x8b   : > { %v495_v17 = vrot.slane %v494_v29, 4  ;;  %v505_v20 = vadd.f32 %v504_v49, %v503_v28  ;;  %v570_v8 = vmul.f32 %v1430_v63, %v422_v11  ;;  %v571_v10 = vmul.f32 %v1436_v2, %v423_v15 }
  0x8c   : > { %v448_v21 = vadd.f32 %v447_v3, %v446_v55  ;;  %v458_v22 = vrot.slane %v457_v61, 2  ;;  %v542_v33 = vadd.f32 %v541_v16, %v539_v52  ;;  %v551_v4 = vadd.f32 %v550_v62, %v523_v43 }
  0x8d   : > { %v496_v18 = vadd.f32 %v495_v17, %v494_v29  ;;  %v506_v23 = vrot.slane %v505_v20, 2  ;;  %v584_v54 = vmul.f32 %v1457_v13, %v568_v51  ;;  %v585_v58 = vmul.f32 %v1460_v14, %v569_v12 }
  0x8e   : > { %v449_v59 = vrot.slane %v448_v21, 2  ;;  %v543_v7 = vrot.slane %v542_v33, 4  ;;  %v552_v25 = vrot.slane %v551_v4, 4  ;;  %v610_v41 = vadd.f32 %v609_v9, %v1479_v48 }
  0x8f   : > { %v459_v63 = vadd.f32 %v458_v22, %v457_v61  ;;  %v497_v11 = vrot.slane %v496_v18, 2  ;;  %v507_v2 = vadd.f32 %v506_v23, %v505_v20  ;;  %v586_v15 = vmul.f32 %v1467_v19, %v570_v8 }
  0x90   : > { %v517_v35 = vrot.slane %v1482_v6, 1  ;;  %v544_v26 = vadd.f32 %v543_v7, %v542_v33  ;;  %v553_v34 = vadd.f32 %v552_v25, %v551_v4  ;;  %v587_v13 = vmul.f32 %v1474_v24, %v571_v10 }
  0x91   : > { %v450_v46 = vadd.f32 %v449_v59, %v448_v21  ;;  %v498_v14 = vadd.f32 %v497_v11, %v496_v18  ;;  %v588_v27 = vadd.f32 %v585_v58, %v584_v54  ;;  %v597_v30 = vadd.f32 %v569_v12, %v568_v51 }
  0x92   : > { %v545_v39 = vrot.slane %v544_v26, 2  ;;  %v554_v36 = vrot.slane %v553_v34, 2  ;;  %v564_v48 = vadd.f32 %v563_v0, %v1476_v47  ;;  %v611_v9 = vrot.slane %v610_v41, 2 }
  0x93   : > { %v460_v44 = vrot.slane %v459_v63, 1  ;;  %v508_v42 = vrot.slane %v507_v2, 1  ;;  %v589_v19 = vadd.f32 %v588_v27, %v586_v15  ;;  %v598_v32 = vadd.f32 %v597_v30, %v570_v8 }
  0x94   : > { %v470_v31 = vadd.f32 %v469_v1, %v1471_v37  ;;  %v546_v24 = vadd.f32 %v545_v39, %v544_v26  ;;  %v555_v43 = vadd.f32 %v554_v36, %v553_v34  ;;  %v451_v38 = vrot.slane %v450_v46, 1 }
  0x95   : > { %v499_v50 = vrot.slane %v498_v14, 1  ;;  %v590_v40 = vadd.f32 %v589_v19, %v587_v13  ;;  %v599_v45 = vadd.f32 %v598_v32, %v571_v10  ;;  %v518_v57 = vadd.f32 %v517_v35, %v1482_v6 }
  0x96   : > { %v556_v28 = vrot.slane %v555_v43, 1  ;;  %v565_v53 = vrot.slane %v564_v48, 1  ;;  %v612_v47 = vadd.f32 %v611_v9, %v610_v41  ;;  %v461_v0 = vadd.f32 %v460_v44, %v459_v63 }
  0x97   : > { %v509_v52 = vadd.f32 %v508_v42, %v507_v2  ;;  %v591_v55 = vrot.slane %v590_v40, 4  ;;  %v600_v5 = vrot.slane %v599_v45, 4  ;;  %v547_v56 = vrot.slane %v546_v24, 1 }
  0x98   : > { %v452_v60 = vadd.f32 %v451_v38, %v450_v46  ;;  %v500_v29 = vadd.f32 %v499_v50, %v498_v14  ;;  %v557_v1 = vadd.f32 %v556_v28, %v555_v43  ;;  %v566_v51 = vadd.f32 %v565_v53, %v564_v48 }
  0x99   : > { %v592_v49 = vadd.f32 %v591_v55, %v590_v40  ;;  %v601_v37 = vadd.f32 %v600_v5, %v599_v45  ;;  %v613_v12 = vrot.slane %v612_v47, 1  ;;  %v471_v3 = vadd.f32 %v470_v31, %v461_v0 }
  0x9a   : > { %v519_v61 = vadd.f32 %v518_v57, %v509_v52  ;;  %v548_v62 = vadd.f32 %v547_v56, %v546_v24  ;;  %v618_v8 = vsel %vm617_vm0, %v452_v60, %v500_v29  ;;  %v567_v10 = vadd.f32 %v566_v51, %v557_v1 }
  0x9b   : > { %v593_v16 = vrot.slane %v592_v49, 2  ;;  %v602_v6 = vrot.slane %v601_v37, 2  ;;  %v614_v33 = vadd.f32 %v613_v12, %v612_v47  ;;  %v643_v26 = vlaneseq }
  0x9c   : > { %v629_v4 = vsel %vm617_vm0, %v471_v3, %v519_v61  ;;  %v620_v18 = vsel %vm619_vm1, %v618_v8, %v548_v62 }
  0x9d   : > { %v594_v17 = vadd.f32 %v593_v16, %v592_v49  ;;  %v603_v20 = vadd.f32 %v602_v6, %v601_v37  ;;  %v630_v58 = vsel %vm619_vm1, %v629_v4, %v567_v10  ;;  %v644_v34 = vand.u32 127, %v643_v26 }
  0x9e   : > { %v646_v13 = vshrl.u32 %v643_v26, 7 }
  0x9f   : > { %v595_v21 = vrot.slane %v594_v17, 1  ;;  %v604_v22 = vrot.slane %v603_v20, 1 }
  0xa0   : > { %v647_v46 = vsub.s32 %v644_v34, %v646_v13 }
  0xa1   : > { %v596_v23 = vadd.f32 %v595_v21, %v594_v17  ;;  %v605_v54 = vadd.f32 %v604_v22, %v603_v20 }
  0xa3   : > { %v615_v59 = vadd.f32 %v614_v33, %v605_v54  ;;  %v622_v7 = vsel %vm621_vm2, %v620_v18, %v596_v23 }
  0xa4   : > { %v624_v25 = vsel %vm623_vm3, %v622_v7, 0.0 }
  0xa5   : > { %v631_v41 = vsel %vm621_vm2, %v630_v58, %v615_v59  ;;  %626 = vst [vmem:[#allocation2] sm:$0xff] %v624_v25 }
  0xa6   : > { %v632_v63 = vsel %vm623_vm3, %v631_v41, 0.0 }
  0xa7   : > { %634 = vst [vmem:[#allocation2 + $0x8] sm:$0xff] %v632_v63 }
  0xac   : > { %v638_v11 = vld [vmem:[#allocation2] sm:$0xf] }
  0xad   : > { %v639_v2 = vsel %vm623_vm3, %v638_v11, 0.0 }
  0xae   : > { %640 = vadd.xlane.f32.xlu0 %v639_v2  ;;  %v652_v15 = vld [vmem:[#allocation2 + $0x8] sm:$0xf] }
  0xaf   : > { %v653_v35 = vsel %vm623_vm3, %v652_v15, 0.0 }
  0xb2   : > { %654 = vadd.xlane.f32.xlu0 %v653_v35 }
 0x137   : > { %v641_v14 = vpop.xlane.xlu0 %640 }
 0x138   : > { %v648_v27 = vrot.slane %v641_v14, %v647_v46 }
 0x13a   : > { %651 = vst.msk [vmem:[%s268_s4] sm:$0x1] %vm650_vm4, %v648_v27 }
 0x13b   : > { %v655_v30 = vpop.xlane.xlu0 %654 }
 0x13c   : > { %1064 = shalt.err (!%p1061_p7)
}
 0x13d   : > { %s1065_s29 = scalar_lea.hbm %s1536_s18, 16  ;;  %s1069_s30 = scalar_lea.hbm %s1614_s2, 32 }
 0x13e   : > { %p1066_p1 = scmp.ne.s32.totalorder %s1536_s18, %s1065_s29  ;;  %p1070_p3 = scmp.lt.s32.totalorder %s1536_s18, %s1614_s2 }
 0x13f   : > { %p1071_p8 = scmp.lt.s32.totalorder %s1069_s30, %s1065_s29 }
 0x140   : > { %p1067_p10 = pnand %p1066_p1, %p1245_p9 }
 0x141   : > { %p1072_p0 = por %p1071_p8, %p1070_p3 }
 0x142   : > { %p1068_p13 = pneg %p1067_p10 }
 0x144   : > { %p1073_p2 = pnand %p1072_p0, %p1068_p13 }
 0x146   : > { %1076 = shalt.err (!%p1073_p2)
}
 0x147   : > { %884 = dma.vmem_to_hbm [thread:$0]  (%p1245_p9), %s1538_s5, 16, %s1536_s18, %s664_s6   ;;  %v660_v39 = vrot.slane %v655_v30, %v647_v46 }
 0x148   : > { %s695_s10 = scalar_lea.hbm %s1615_s3, %s875_s24  ;;  %s668_s22 = scalar_lea.sflag [#allocation10], %s1302_s28 }
 0x149   : > { %662 = vst.msk [vmem:[%s274_s19] sm:$0x1] %vm650_vm4, %v660_v39  ;;  %s1077_s23 = scalar_lea.vmem %s698_s21, 16  ;;  %s1173_s29 = smov [#allocation9]  }
 0x14a   : > { %p1078_p5 = scmp.ne.s32.totalorder %s698_s21, %s1077_s23  ;;  %s1081_s0 = sshll.u32 %s1173_s29, 4  ;;  %s1082_s0 = int_to_ptr.vmem [resolvable:$false] %s1081_s0 }
 0x14b   : > { %s1083_s5 = scalar_lea.vmem %s1082_s0, 32  ;;  %p1084_p7 = scmp.lt.s32.totalorder %s698_s21, %s1082_s0 }
 0x14c   : > { %p1079_p6 = pnand %p1078_p5, %p1245_p9  ;;  %p1085_p1 = scmp.lt.s32.totalorder %s1083_s5, %s1077_s23 }
 0x14e   : > { %p1080_p4 = pneg %p1079_p6  ;;  %p1086_p10 = por %p1085_p1, %p1084_p7 }
 0x150   : > { %p1087_p13 = pnand %p1086_p10, %p1080_p4 }
 0x152   : > { %1090 = shalt.err (!%p1087_p13)
}
 0x153   : > { %s1091_s15 = scalar_lea.hbm %s695_s10, 16  ;;  %s1095_s18 = scalar_lea.hbm %s1615_s3, 32 }
 0x154   : > { %p1092_p3 = scmp.ne.s32.totalorder %s695_s10, %s1091_s15  ;;  %p1096_p2 = scmp.lt.s32.totalorder %s695_s10, %s1615_s3 }
 0x155   : > { %p1097_p5 = scmp.lt.s32.totalorder %s1095_s18, %s1091_s15 }
 0x156   : > { %p1093_p8 = pnand %p1092_p3, %p1245_p9 }
 0x157   : > { %p1098_p6 = por %p1097_p5, %p1096_p2 }
 0x158   : > { %p1094_p0 = pneg %p1093_p8 }
 0x15a   : > { %p1099_p12 = pnand %p1098_p6, %p1094_p0 }
 0x15c   : > { %1102 = shalt.err (!%p1099_p12)
}
 0x15d   : > { %885 = dma.vmem_to_hbm [thread:$0]  (%p1245_p9), %s698_s21, 16, %s695_s10, %s668_s22  }
 0x15e PF: > { %s709_s9 = sand.u32 1, %s1145_s12   ;;  %p1624_p4 = scmp.ge.s32.totalorder %s1165_s17, 2 }
 0x15f   : > { %s710_s30 = scalar_lea.sflag [#allocation5], %s709_s9 }
 0x160   : > { %p896_p7 = pnand %p1624_p4, %p1252_p11 }
 0x162   : > { %p897_p1 = pneg %p896_p7 }
 0x164   : > { %1136 = dma.done.wait (%p897_p1), %s710_s30, 16  }
 0x165   : > { %1138 = vsyncadd (%p897_p1), %s710_s30, 4294967280  ;;  %s718_s4 = scalar_lea.sflag [#allocation10], %s709_s9 }
 0x166   : > { %1140 = dma.done.wait (%p897_p1), %s718_s4, 16  }
 0x167   : > { %1142 = vsyncadd (%p897_p1), %s718_s4, 4294967280  ;;  %s26_s17 = sadd.s32 1, %s1165_s17   ;;  %s1625_s12 = smov %s1149_s13 }
 0x168   : > { %p23_p12 = scmp.ge.s32.totalorder %s26_s17, 4   ;;  %s1626_s13 = smov %s1153_s14 }
 0x169   : > { %s1627_s14 = smov %s1250_s26  ;;  %s1628_s15 = smov %s1161_s16 }
 0x16a   : > { %s1629_s16 = smov %s1631_s20  ;;  %25 = sbr.rel (!%p23_p12) target bundleno = 12 (0xc), region = 115 }
 0x16f   :  { %722 = vsyncpa [#allocation4], 1 }
 0x170   :  { %724 = vsyncpa [#allocation4 + $0x1], 1 }
 0x171   :  { %725 = vsyncpa [#allocation7], 1 }
 0x172   :  { %727 = vsyncpa [#allocation7 + $0x1], 1 }
 0x173   :  { %728 = vsyncpa [#allocation5], 1 }
 0x174   :  { %730 = vsyncpa [#allocation5 + $0x1], 1 }
 0x175   :  { %731 = vsyncpa [#allocation10], 1 }
 0x176   :  { %733 = vsyncpa [#allocation10 + $0x1], 1 }

</bundles_post_ra>
